<compile_context>
chip_gen: v5e
topology: v5e:2x2
jax: 0.10.0
libtpu: 0.0.40
codegen_flags: <defaults>
</compile_context>

<pallas_src>
import itertools
import math

import jax
import jax.numpy as jnp
import numpy as np
from jax.experimental import pallas as pl
from jax.experimental.pallas import tpu as pltpu


# ----------------------------------------------------------------------------
# Mask construction (plain numpy glue; mirrors make_mask(..., 'densest'))
# ----------------------------------------------------------------------------
def make_mask_densest(in_dim: int, out_dim: int) -> np.ndarray:
    assert out_dim < 2 ** in_dim
    assert in_dim > 0 and out_dim > 0
    mask = np.ones((out_dim, in_dim), dtype=np.float32)
    mask[0, :] = 1.0
    row_idx = 1
    if out_dim == 1:
        return mask
    for nz in range(1, in_dim):
        for zeros_in_row in itertools.combinations(range(in_dim), nz):
            mask[row_idx, list(zeros_in_row)] = 0.0
            row_idx += 1
            if row_idx >= out_dim:
                return mask
    return mask


# ----------------------------------------------------------------------------
# Pallas kernel
# ----------------------------------------------------------------------------
def _sparse_linear_kernel(x_ref, w_ref, bias_ref, o_ref):
    """Grid = (j over out_dim tiles [parallel], i over batch tiles [arbitrary]).

    The folded effective weight is a single stream whose block index depends
    only on j, so it is DMA'd once per out-dim tile and reused across all
    batch tiles.  (tile_m, K) @ (K, tile_n) -> (tile_m, tile_n) on the MXU,
    transpose-free, f32 accumulation.
    """
    y = jnp.dot(x_ref[...], w_ref[...], preferred_element_type=jnp.float32)
    o_ref[...] = y + bias_ref[...]        # bias block (1, tile_n) broadcasts


# ----------------------------------------------------------------------------
# Wrapper helpers
# ----------------------------------------------------------------------------
def _round_up(x: int, m: int) -> int:
    return ((x + m - 1) // m) * m


def _physical_vmem_bytes() -> int:
    # Conservative fallback = v7x per-TC VMEM (64 MiB); raised when queryable.
    try:
        info = pltpu.get_tpu_info()
        return int(getattr(info, "vmem_capacity_bytes", 64 << 20))
    except Exception:
        return 64 << 20


def prepare_sparse_linear(weight, mask, normal_mask, bias, *, mask_constant=1.0,
                          compute_dtype=jnp.bfloat16):
    """Fold + transpose + pad the frozen effective weight once.

    Returns (w_eff_padT, bias_pad, out_dim) — cache these across calls when the
    weights are frozen (inference): the kernel then streams a single weight
    array and no per-call transpose/pad passes are needed.
    """
    out_dim, in_dim = weight.shape
    K_pad = _round_up(in_dim, 128)
    N_pad = _round_up(out_dim, 128)

    # Single fused fold:  W_eff.T = (W*M + (1-M)*c*N).T   ->   (in_dim, out_dim)
    w_eff_t = (weight * mask
               + (1.0 - mask) * mask_constant * normal_mask).T.astype(compute_dtype)
    w_p = jnp.pad(w_eff_t, ((0, K_pad - in_dim), (0, N_pad - out_dim)))
    bias_p = jnp.pad(bias.astype(jnp.float32),
                     (0, N_pad - out_dim)).reshape(1, N_pad)
    return w_p, bias_p, out_dim


def sparse_linear_apply(x, w_p, bias_p, out_dim, *, compute_dtype=jnp.bfloat16):
    """x: (B, in_dim); w_p: (K_pad, N_pad) pre-folded/padded; bias_p: (1, N_pad)."""
    B, in_dim = x.shape
    K_pad, N_pad = w_p.shape
    cbytes = jnp.dtype(compute_dtype).itemsize

    # ---- batch tile: pad the batch up to the tile instead of degrading to 8.
    if B >= 256:
        tile_m = 256
    elif B >= 64:
        tile_m = 128
    else:
        tile_m = _round_up(max(B, 1), 8)      # truly tiny batch
    M_pad = _round_up(B, tile_m)

    # ---- out_dim tile: as large as possible, but keep >= 2 j tiles when we
    # can so the leading "parallel" axis shards across both v7x TensorCores.
    tile_n = None
    for cand in (2048, 1024, 512, 256, 128):
        if N_pad % cand == 0 and N_pad // cand >= 2:
            tile_n = cand
            break
    if tile_n is None:
        tile_n = N_pad                         # out_dim fits in one 128-lane tile

    # ---- VMEM budget (double-buffered x & w_eff in compute_dtype; bias/out f32)
    def vmem_need(tm, tn):
        return (2 * (tm * K_pad + K_pad * tn) * cbytes
                + 2 * (tn + tm * tn) * 4)

    budget = 40 << 20                          # safe even on v7x's 64 MiB/TC
    while tile_n > 128 and vmem_need(tile_m, tile_n) > budget:
        tile_n //= 2

    vmem_cap = int(_physical_vmem_bytes() * 0.75)
    vmem_limit = int(min(max(vmem_need(tile_m, tile_n) + (8 << 20), 32 << 20),
                         vmem_cap))

    # ---- pad activations (exact-zero padding, sliced off at the end)
    x_p = jnp.pad(x.astype(compute_dtype),
                  ((0, M_pad - B), (0, K_pad - in_dim)))

    grid = (N_pad // tile_n, M_pad // tile_m)   # (j, i); batch innermost

    # x is re-read once per j tile (i innermost); w_eff/bias read once total.
    cost = pl.CostEstimate(
        flops=2 * M_pad * K_pad * N_pad,
        transcendentals=0,
        bytes_accessed=((N_pad // tile_n) * M_pad * K_pad * cbytes
                        + K_pad * N_pad * cbytes
                        + N_pad * 4
                        + M_pad * N_pad * 4),
    )

    out_p = pl.pallas_call(
        _sparse_linear_kernel,
        out_shape=jax.ShapeDtypeStruct((M_pad, N_pad), jnp.float32),
        grid_spec=pltpu.PrefetchScalarGridSpec(
            num_scalar_prefetch=0,
            grid=grid,
            in_specs=[
                pl.BlockSpec((tile_m, K_pad), lambda j, i: (i, 0)),   # x
                pl.BlockSpec((K_pad, tile_n), lambda j, i: (0, j)),   # W_eff.T
                pl.BlockSpec((1, tile_n), lambda j, i: (0, j)),       # bias
            ],
            out_specs=pl.BlockSpec((tile_m, tile_n), lambda j, i: (i, j)),
        ),
        compiler_params=pltpu.CompilerParams(
            dimension_semantics=("parallel", "arbitrary"),
            vmem_limit_bytes=vmem_limit,
        ),
        cost_estimate=cost,
    )(x_p, w_p, bias_p)

    return out_p[:B, :out_dim]


def sparse_linear(x, weight, mask, normal_mask, bias, *, mask_constant=1.0,
                  compute_dtype=jnp.bfloat16):
    """Convenience one-shot wrapper: fold weights + run the kernel."""
    w_p, bias_p, out_dim = prepare_sparse_linear(
        weight, mask, normal_mask, bias,
        mask_constant=mask_constant, compute_dtype=compute_dtype)
    return sparse_linear_apply(x, w_p, bias_p, out_dim,
                               compute_dtype=compute_dtype)


# ----------------------------------------------------------------------------
# Deterministic parameter init (mirrors reset_parameters; synthetic weights)
# ----------------------------------------------------------------------------
def init_sparse_linear(key, in_dim, out_dim, mask_constant=1.0,
                       do_normal_mask=True):
    k_w, k_b, k_n = jax.random.split(key, 3)

    mask = jnp.asarray(make_mask_densest(in_dim, out_dim))

    if do_normal_mask:
        normal_mask = jax.random.normal(k_n, (out_dim, in_dim), dtype=jnp.float32)
    else:
        normal_mask = jnp.ones((out_dim, in_dim), dtype=jnp.float32)

    # kaiming_uniform_(a=sqrt(5)) -> bound = 1/sqrt(fan_in), fan_in = in_dim
    w_bound = 1.0 / math.sqrt(in_dim)
    weight = jax.random.uniform(k_w, (out_dim, in_dim), jnp.float32,
                                -w_bound, w_bound)
    # apply masking at init (same formula as forward; idempotent for 0/1 mask)
    weight = weight * mask + (1.0 - mask) * mask_constant * normal_mask

    b_bound = 1.0 / math.sqrt(in_dim)
    bias = jax.random.uniform(k_b, (out_dim,), jnp.float32, -b_bound, b_bound)

    return weight, mask, normal_mask, bias


# ----------------------------------------------------------------------------
if __name__ == "__main__":
    mask_constant = 1.0
    key = jax.random.PRNGKey(0)
    k_params, k_x, k_x2 = jax.random.split(key, 3)

    # --- case 1: small, matches the module's typical tiny shapes -------------
    in_dim, out_dim, batch = 32, 16, 8
    weight, mask, nmask, bias = init_sparse_linear(
        k_params, in_dim, out_dim, mask_constant=mask_constant)
    x = jax.random.normal(k_x, (batch, in_dim), dtype=jnp.float32)

    w_eff = weight * mask + (1.0 - mask) * mask_constant * nmask
    y_ref = x @ w_eff.T + bias

    # exact-semantics path (f32 streams)
    y_f32 = jax.block_until_ready(
        sparse_linear(x, weight, mask, nmask, bias,
                      mask_constant=mask_constant, compute_dtype=jnp.float32))
    np.testing.assert_allclose(np.asarray(y_f32), np.asarray(y_ref),
                               rtol=2e-5, atol=2e-5)

    # bandwidth-optimized default path (bf16 streams, f32 accumulation)
    y_bf16 = jax.block_until_ready(
        sparse_linear(x, weight, mask, nmask, bias, mask_constant=mask_constant))
    np.testing.assert_allclose(np.asarray(y_bf16), np.asarray(y_ref),
                               rtol=5e-2, atol=2.5e-1)

    # --- case 2: non-aligned shapes, multiple out_dim tiles, padding ---------
    in2, out2, b2 = 12, 300, 5
    w2, m2, n2, bi2 = init_sparse_linear(
        jax.random.PRNGKey(1), in2, out2, mask_constant=mask_constant)
    x2 = jax.random.normal(k_x2, (b2, in2), dtype=jnp.float32)

    y2 = jax.block_until_ready(
        sparse_linear(x2, w2, m2, n2, bi2, mask_constant=mask_constant))
    w_eff2 = w2 * m2 + (1.0 - m2) * mask_constant * n2
    y2_ref = x2 @ w_eff2.T + bi2
    np.testing.assert_allclose(np.asarray(y2), np.asarray(y2_ref),
                               rtol=5e-2, atol=2.5e-1)

    print("KERNEL_OK")
</pallas_src>

<mosaic_0001>
module attributes {stable_mosaic.version = 11 : i64} {
  func.func @_sparse_linear_kernel(%arg0: i32, %arg1: i32, %arg2: memref<8x128xf32, #tpu.memory_space<vmem>>, %arg3: memref<128x128xf32, #tpu.memory_space<vmem>>, %arg4: memref<1x128xf32, #tpu.memory_space<vmem>>, %arg5: memref<8x128xf32, #tpu.memory_space<vmem>>) attributes {dimension_semantics = [#tpu.dimension_semantics<parallel>, #tpu.dimension_semantics<arbitrary>], iteration_bounds = array<i64: 1, 1>, scalar_prefetch = 0 : i64, scratch_operands = 0 : i64, tpu.core_type = #tpu.core_type<tc>, window_params = [{transform_indices = @transform_0, window_bounds = array<i64: 8, 128>}, {transform_indices = @transform_1, window_bounds = array<i64: 128, 128>}, {transform_indices = @transform_2, window_bounds = array<i64: 1, 128>}, {transform_indices = @transform_3, window_bounds = array<i64: 8, 128>}]} {
    %c0 = arith.constant 0 : index
    %c0_0 = arith.constant 0 : index
    %0 = vector.load %arg2[%c0, %c0_0] : memref<8x128xf32, #tpu.memory_space<vmem>>, vector<8x128xf32>
    %c0_1 = arith.constant 0 : index
    %c0_2 = arith.constant 0 : index
    %1 = vector.load %arg3[%c0_1, %c0_2] : memref<128x128xf32, #tpu.memory_space<vmem>>, vector<128x128xf32>
    %cst = arith.constant dense<0.000000e+00> : vector<8x128xf32>
    %2 = tpu.matmul %0, %1, %cst {dimension_numbers = #tpu.dot_dimension_numbers<[1], [0], [0], [1], [0, 0, 1, 1], [], []>} : vector<8x128xf32>, vector<128x128xf32>, vector<8x128xf32> -> vector<8x128xf32>
    %c0_3 = arith.constant 0 : index
    %c0_4 = arith.constant 0 : index
    %3 = vector.load %arg4[%c0_3, %c0_4] : memref<1x128xf32, #tpu.memory_space<vmem>>, vector<1x128xf32>
    %4 = vector.broadcast %3 : vector<1x128xf32> to vector<8x128xf32>
    %5 = arith.addf %2, %4 : vector<8x128xf32>
    %c0_5 = arith.constant 0 : index
    %c0_6 = arith.constant 0 : index
    %6 = vector.load %arg5[%c0_5, %c0_6] : memref<8x128xf32, #tpu.memory_space<vmem>>, vector<8x128xf32>
    tpu.vector_store %arg5[%c0_5, %c0_6], %5 {strides = array<i32>} : memref<8x128xf32, #tpu.memory_space<vmem>>, vector<8x128xf32>,
    return
  }
  func.func @transform_0(%arg0: i32, %arg1: i32) -> (i32, i32) {
    %c0_i32 = arith.constant 0 : i32
    %c0_i32_0 = arith.constant 0 : i32
    return %arg1, %c0_i32 : i32, i32
  }
  func.func @transform_1(%arg0: i32, %arg1: i32) -> (i32, i32) {
    %c0_i32 = arith.constant 0 : i32
    %c0_i32_0 = arith.constant 0 : i32
    return %c0_i32, %arg0 : i32, i32
  }
  func.func @transform_2(%arg0: i32, %arg1: i32) -> (i32, i32) {
    %c0_i32 = arith.constant 0 : i32
    %c0_i32_0 = arith.constant 0 : i32
    return %c0_i32, %arg0 : i32, i32
  }
  func.func @transform_3(%arg0: i32, %arg1: i32) -> (i32, i32) {
    %c0_i32 = arith.constant 0 : i32
    return %arg1, %arg0 : i32, i32
  }
}

</mosaic_0001>

<bundles_post_ra>
// kernel: tpu_custom_call.1
= control target key start
LH: loop header
LB: loop body
LE: loop exit
PB: predicated region body
PF: predicated region fallthrough
CT: control target
= control target key end

     0   :  { %8 = vsyncpa [#allocation3], 0  ;;  %s226_s0 = inlined_call_operand.hbm [shape: f32[8,128], index: 0, kind: input, shape index: {}]   ;;  %s227_s1 = inlined_call_operand.hbm [shape: f32[128,128], index: 1, kind: input, shape index: {}]   ;;  %s228_s2 = inlined_call_operand.vmem [shape: f32[1,128], index: 2, kind: input, shape index: {}]   ;;  %s229_s3 = inlined_call_operand.hbm [shape: f32[8,128], index: 3, kind: output, shape index: {}]  }
   0x1   :  { %9 = vsyncpa [#allocation6], 0 }
   0x2   :  { %10 = vsyncpa [#allocation4], 0  ;;  %s16_s14 = sshll.u32 %s226_s0, 4  ;;  %s189_s15 = smov [#allocation2]   ;;  %s17_s14 = int_to_ptr.hbm [resolvable:$true] %s16_s14 }
   0x3   :  { %s18_s16 = sshll.u32 %s189_s15, 4  ;;  %s26_s19 = sshll.u32 %s227_s1, 4  ;;  %s19_s16 = int_to_ptr.vmem [resolvable:$true] %s18_s16  ;;  %s27_s19 = int_to_ptr.hbm [resolvable:$true] %s26_s19 }
   0x4   :  { %21 = dma.hbm_to_vmem [thread:$0]  %s17_s14, 128, %s19_s16, [#allocation3]  }
   0x5   :  { %s190_s20 = smov [#allocation5]   ;;  %s191_s22 = smov 128  }
   0x6   :  { %s28_s21 = sshll.u32 %s190_s20, 4  ;;  %s192_s23 = smov 8   ;;  %s29_s21 = int_to_ptr.vmem [resolvable:$true] %s28_s21 }
   0x7   :  { %34 = dma.hbm_to_vmem [thread:$0]  %s27_s19, 2048, %s29_s21, [#allocation6], %s191_s22, %s191_s22, %s192_s23  }
   0x8   :  { %183 = dma.done.wait [#allocation3], 128  }
   0x9   :  { %184 = vsyncadd [#allocation3], 4294967168 }
   0xa   :  { %185 = dma.done.wait [#allocation6], 2048  }
   0xb   :  { %186 = vsyncadd [#allocation6], 4294965248  ;;  %v61_v0 = vld [vmem:[#allocation5 + $0x78] sm:$0xff]  ;;  %v60_v1 = vld [vmem:[#allocation5 + $0x70] sm:$0xff]  ;;  %s193_s24 = smov [#allocation7]   ;;  %s94_s28 = sshll.u32 %s229_s3, 4  ;;  %s95_s28 = int_to_ptr.hbm [resolvable:$true] %s94_s28 }
   0xc   :  { %66 = vmatpush.msra.mxu0 %v61_v0  ;;  %v59_v2 = vld [vmem:[#allocation5 + $0x68] sm:$0xff]  ;;  %v58_v3 = vld [vmem:[#allocation5 + $0x60] sm:$0xff]  ;;  %v57_v4 = vld [vmem:[#allocation5 + $0x58] sm:$0xff]  ;;  %s92_s25 = sshll.u32 %s193_s24, 4  ;;  %s93_s25 = int_to_ptr.vmem [resolvable:$true] %s92_s25 }
   0xd   :  { %v56_v5 = vld [vmem:[#allocation5 + $0x50] sm:$0xff]  ;;  %v55_v6 = vld [vmem:[#allocation5 + $0x48] sm:$0xff]  ;;  %v54_v7 = vld [vmem:[#allocation5 + $0x40] sm:$0xff] }
   0xe   :  { %67 = vmatpush.msra.mxu0 %v60_v1  ;;  %v53_v8 = vld [vmem:[#allocation5 + $0x38] sm:$0xff]  ;;  %v52_v9 = vld [vmem:[#allocation5 + $0x30] sm:$0xff]  ;;  %v51_v10 = vld [vmem:[#allocation5 + $0x28] sm:$0xff] }
   0xf   :  { %v50_v11 = vld [vmem:[#allocation5 + $0x20] sm:$0xff]  ;;  %v49_v12 = vld [vmem:[#allocation5 + $0x18] sm:$0xff]  ;;  %v48_v13 = vld [vmem:[#allocation5 + $0x10] sm:$0xff] }
  0x10   :  { %68 = vmatpush.msra.mxu0 %v59_v2  ;;  %v47_v14 = vld [vmem:[#allocation5 + $0x8] sm:$0xff]  ;;  %v46_v15 = vld [vmem:[#allocation5] sm:$0xff]  ;;  %v45_v16 = vld [vmem:[#allocation2] sm:$0xff] }
  0x11   :  { %v110_v17 = vld [vmem:[%s228_s2] ss:$0 sm:$0xff] }
  0x12   :  { %69 = vmatpush.msra.mxu0 %v58_v3 }
  0x14   :  { %70 = vmatpush.msra.mxu0 %v57_v4 }
  0x16   :  { %71 = vmatpush.msra.mxu0 %v56_v5 }
  0x18   :  { %72 = vmatpush.msra.mxu0 %v55_v6 }
  0x1a   :  { %73 = vmatpush.msra.mxu0 %v54_v7 }
  0x1c   :  { %74 = vmatpush.msra.mxu0 %v53_v8 }
  0x1e   :  { %75 = vmatpush.msra.mxu0 %v52_v9 }
  0x20   :  { %76 = vmatpush.msra.mxu0 %v51_v10 }
  0x22   :  { %77 = vmatpush.msra.mxu0 %v50_v11 }
  0x24   :  { %78 = vmatpush.msra.mxu0 %v49_v12 }
  0x26   :  { %79 = vmatpush.msra.mxu0 %v48_v13 }
  0x28   :  { %80 = vmatpush.msra.mxu0 %v47_v14 }
  0x2a   :  { %81 = vmatpush.msra.mxu0 %v46_v15 }
  0x2b   :  { %82 = vmatmul.f32.vlgmr.msra.gmra.mxu0 %v45_v16 }
  0xa8   :  { %v83_v18 = vpop.f32.mrf.mxu0 }
  0xa9   :  { %v84_v19 = vadd.f32 %v110_v17, %v83_v18 }
  0xab   :  { %86 = vst [vmem:[#allocation7] sm:$0xff] %v84_v19 }
  0xac   :  { %97 = dma.vmem_to_hbm [thread:$0]  %s93_s25, 128, %s95_s28, [#allocation4]  }
  0xad   :  { %187 = dma.done.wait [#allocation4], 128  }
  0xae   :  { %188 = vsyncadd [#allocation4], 4294967168 }
  0xaf   :  { %102 = vsyncpa [#allocation3], 1 }
  0xb0   :  { %103 = vsyncpa [#allocation6], 1 }
  0xb1   :  { %104 = vsyncpa [#allocation4], 1 }

</bundles_post_ra>
